<compile_context>
chip_gen: v7x
topology: tpu7x:2x2x1
jax: 0.10.0
libtpu: 0.0.40
codegen_flags: <defaults>
</compile_context>

<pallas_src>
import jax
import jax.numpy as jnp
from jax import lax
from jax.experimental import pallas as pl
from jax.experimental.pallas import tpu as pltpu


INPUT_SIZE = 4
HIDDEN_SIZE = 30
SEQ_LEN = 8


def rnn_kernel(x_ref, wih_ref, whh_ref, out_ref):
    # x_ref:   (1, seq, input)      f32 VMEM
    # wih_ref: (hidden, input)      f32 VMEM  (PyTorch layout, untransposed)
    # whh_ref: (hidden, hidden)     f32 VMEM  (PyTorch layout, untransposed)
    # out_ref: (1, 1)               f32 VMEM  (final h[-1], the module's scalar output)
    seq = x_ref.shape[1]
    hid = whh_ref.shape[0]

    # Contract against dim 1 of the weights ( == lhs @ rhs.T ); no transposes needed.
    dn_t = (((1,), (1,)), ((), ()))

    # bf16 operands for the MXU (single pass on v6e/v7x), f32 accumulation.
    x_bf = x_ref[0].astype(jnp.bfloat16)            # (seq, input)
    wih_bf = wih_ref[...].astype(jnp.bfloat16)      # (hidden, input)
    whh_bf = whh_ref[...].astype(jnp.bfloat16)      # (hidden, hidden), cast once, vreg-resident

    # Hoisted input projection: one (seq,in)x(hid,in)^T matmul, off the serial chain.
    xw = lax.dot_general(x_bf, wih_bf, dn_t,
                         preferred_element_type=jnp.float32)   # (seq, hidden) f32

    # h0 == 0  =>  first step is just tanh(xw[0]); skip the zero-state matmul.
    h = jnp.tanh(xw[0:1, :])                                   # (1, hidden) f32, in vregs

    # Fully-unrolled serial recurrence: one bf16 MXU matmul + add + tanh (EUP) per step.
    for t in range(1, seq):
        hw = lax.dot_general(h.astype(jnp.bfloat16), whh_bf, dn_t,
                             preferred_element_type=jnp.float32)
        h = jnp.tanh(xw[t:t + 1, :] + hw)

    # Final scalar produced in-kernel: masked lane reduction (VPU select + XLU reduce),
    # keeps everything vector-shaped — no vreg->sreg extract, no wide masked store.
    lane = lax.broadcasted_iota(jnp.int32, (1, hid), 1)
    out_ref[...] = jnp.sum(jnp.where(lane == hid - 1, h, 0.0),
                           axis=1, keepdims=True).astype(out_ref.dtype)


def rnn_last_scalar(x, w_ih, w_hh):
    """x: (1, seq, input); w_ih: (hidden, input); w_hh: (hidden, hidden).
    Returns (1, 1) array holding the last element of the final hidden state."""
    return pl.pallas_call(
        rnn_kernel,
        out_shape=jax.ShapeDtypeStruct((1, 1), jnp.float32),
        in_specs=[
            pl.BlockSpec(memory_space=pltpu.MemorySpace.VMEM),  # x (1, seq, input)
            pl.BlockSpec(memory_space=pltpu.MemorySpace.VMEM),  # W_ih (hidden, input)
            pl.BlockSpec(memory_space=pltpu.MemorySpace.VMEM),  # W_hh (hidden, hidden)
        ],
        out_specs=pl.BlockSpec(memory_space=pltpu.MemorySpace.VMEM),
    )(x, w_ih, w_hh)


@jax.jit
def rnn_forward(x, w_ih, w_hh):
    """Full module forward. x: (1, seq, input). Returns scalar, matching
    rnn(x, h0)[0][:, -1, :].squeeze()[-1]."""
    return rnn_last_scalar(x, w_ih, w_hh)[0, 0]


def reference_forward(x, w_ih, w_hh):
    """Pure-JAX f32 reference of the same computation (for sanity check)."""
    x_seq = x[0]
    h = jnp.zeros((1, w_ih.shape[0]), jnp.float32)
    for t in range(x_seq.shape[0]):
        h = jnp.tanh(x_seq[t:t + 1, :] @ w_ih.T + h @ w_hh.T)
    return h[0, -1]


if __name__ == "__main__":
    key = jax.random.PRNGKey(0)
    k_x, k_ih, k_hh = jax.random.split(key, 3)

    # PyTorch default init range: U(-1/sqrt(H), 1/sqrt(H))
    bound = 1.0 / (HIDDEN_SIZE ** 0.5)
    w_ih = jax.random.uniform(k_ih, (HIDDEN_SIZE, INPUT_SIZE),
                              minval=-bound, maxval=bound, dtype=jnp.float32)
    w_hh = jax.random.uniform(k_hh, (HIDDEN_SIZE, HIDDEN_SIZE),
                              minval=-bound, maxval=bound, dtype=jnp.float32)

    # Input: batch=1 (forced by the module's fixed h0 shape), seq=8, input_size=4
    x = jax.random.normal(k_x, (1, SEQ_LEN, INPUT_SIZE), dtype=jnp.float32)

    out = jax.block_until_ready(rnn_forward(x, w_ih, w_hh))
    ref = reference_forward(x, w_ih, w_hh)

    # bf16 MXU operands (f32 accumulation) drift slightly from the f32 reference.
    assert jnp.allclose(out, ref, atol=3e-2, rtol=0.0), (out, ref)

    print("KERNEL_OK")
</pallas_src>

<mosaic_0001>
module attributes {stable_mosaic.version = 11 : i64} {
  func.func @rnn_kernel(%arg0: memref<1x8x4xf32, #tpu.memory_space<vmem>>, %arg1: memref<30x4xf32, #tpu.memory_space<vmem>>, %arg2: memref<30x30xf32, #tpu.memory_space<vmem>>, %arg3: memref<1x1xf32, #tpu.memory_space<vmem>>) attributes {dimension_semantics = [], scalar_prefetch = 0 : i64, scratch_operands = 0 : i64, tpu.core_type = #tpu.core_type<tc>} {
    %c0 = arith.constant 0 : index
    %c0_0 = arith.constant 0 : index
    %c0_1 = arith.constant 0 : index
    %0 = vector.load %arg0[%c0, %c0_0, %c0_1] : memref<1x8x4xf32, #tpu.memory_space<vmem>>, vector<1x8x4xf32>
    %1 = vector.shape_cast %0 : vector<1x8x4xf32> to vector<8x4xf32>
    %2 = arith.truncf %1 : vector<8x4xf32> to vector<8x4xbf16>
    %c0_2 = arith.constant 0 : index
    %c0_3 = arith.constant 0 : index
    %3 = vector.load %arg1[%c0_2, %c0_3] : memref<30x4xf32, #tpu.memory_space<vmem>>, vector<30x4xf32>
    %4 = arith.truncf %3 : vector<30x4xf32> to vector<30x4xbf16>
    %c0_4 = arith.constant 0 : index
    %c0_5 = arith.constant 0 : index
    %5 = vector.load %arg2[%c0_4, %c0_5] : memref<30x30xf32, #tpu.memory_space<vmem>>, vector<30x30xf32>
    %6 = arith.truncf %5 : vector<30x30xf32> to vector<30x30xbf16>
    %cst = arith.constant dense<0.000000e+00> : vector<8x30xf32>
    %7 = tpu.matmul %2, %4, %cst {dimension_numbers = #tpu.dot_dimension_numbers<[1], [1], [0], [0], [0, 0, 1, 0], [], []>} : vector<8x4xbf16>, vector<30x4xbf16>, vector<8x30xf32> -> vector<8x30xf32>
    %8 = vector.extract_strided_slice %7 {offsets = [0, 0], sizes = [1, 30], strides = [1, 1]} : vector<8x30xf32> to vector<1x30xf32>
    %9 = math.tanh %8 : vector<1x30xf32>
    %10 = arith.truncf %9 : vector<1x30xf32> to vector<1x30xbf16>
    %cst_6 = arith.constant dense<0.000000e+00> : vector<1x30xf32>
    %11 = tpu.matmul %10, %6, %cst_6 {dimension_numbers = #tpu.dot_dimension_numbers<[1], [1], [0], [0], [0, 0, 1, 0], [], []>} : vector<1x30xbf16>, vector<30x30xbf16>, vector<1x30xf32> -> vector<1x30xf32>
    %12 = vector.extract_strided_slice %7 {offsets = [1, 0], sizes = [1, 30], strides = [1, 1]} : vector<8x30xf32> to vector<1x30xf32>
    %13 = arith.addf %12, %11 : vector<1x30xf32>
    %14 = math.tanh %13 : vector<1x30xf32>
    %15 = arith.truncf %14 : vector<1x30xf32> to vector<1x30xbf16>
    %cst_7 = arith.constant dense<0.000000e+00> : vector<1x30xf32>
    %16 = tpu.matmul %15, %6, %cst_7 {dimension_numbers = #tpu.dot_dimension_numbers<[1], [1], [0], [0], [0, 0, 1, 0], [], []>} : vector<1x30xbf16>, vector<30x30xbf16>, vector<1x30xf32> -> vector<1x30xf32>
    %17 = vector.extract_strided_slice %7 {offsets = [2, 0], sizes = [1, 30], strides = [1, 1]} : vector<8x30xf32> to vector<1x30xf32>
    %18 = arith.addf %17, %16 : vector<1x30xf32>
    %19 = math.tanh %18 : vector<1x30xf32>
    %20 = arith.truncf %19 : vector<1x30xf32> to vector<1x30xbf16>
    %cst_8 = arith.constant dense<0.000000e+00> : vector<1x30xf32>
    %21 = tpu.matmul %20, %6, %cst_8 {dimension_numbers = #tpu.dot_dimension_numbers<[1], [1], [0], [0], [0, 0, 1, 0], [], []>} : vector<1x30xbf16>, vector<30x30xbf16>, vector<1x30xf32> -> vector<1x30xf32>
    %22 = vector.extract_strided_slice %7 {offsets = [3, 0], sizes = [1, 30], strides = [1, 1]} : vector<8x30xf32> to vector<1x30xf32>
    %23 = arith.addf %22, %21 : vector<1x30xf32>
    %24 = math.tanh %23 : vector<1x30xf32>
    %25 = arith.truncf %24 : vector<1x30xf32> to vector<1x30xbf16>
    %cst_9 = arith.constant dense<0.000000e+00> : vector<1x30xf32>
    %26 = tpu.matmul %25, %6, %cst_9 {dimension_numbers = #tpu.dot_dimension_numbers<[1], [1], [0], [0], [0, 0, 1, 0], [], []>} : vector<1x30xbf16>, vector<30x30xbf16>, vector<1x30xf32> -> vector<1x30xf32>
    %27 = vector.extract_strided_slice %7 {offsets = [4, 0], sizes = [1, 30], strides = [1, 1]} : vector<8x30xf32> to vector<1x30xf32>
    %28 = arith.addf %27, %26 : vector<1x30xf32>
    %29 = math.tanh %28 : vector<1x30xf32>
    %30 = arith.truncf %29 : vector<1x30xf32> to vector<1x30xbf16>
    %cst_10 = arith.constant dense<0.000000e+00> : vector<1x30xf32>
    %31 = tpu.matmul %30, %6, %cst_10 {dimension_numbers = #tpu.dot_dimension_numbers<[1], [1], [0], [0], [0, 0, 1, 0], [], []>} : vector<1x30xbf16>, vector<30x30xbf16>, vector<1x30xf32> -> vector<1x30xf32>
    %32 = vector.extract_strided_slice %7 {offsets = [5, 0], sizes = [1, 30], strides = [1, 1]} : vector<8x30xf32> to vector<1x30xf32>
    %33 = arith.addf %32, %31 : vector<1x30xf32>
    %34 = math.tanh %33 : vector<1x30xf32>
    %35 = arith.truncf %34 : vector<1x30xf32> to vector<1x30xbf16>
    %cst_11 = arith.constant dense<0.000000e+00> : vector<1x30xf32>
    %36 = tpu.matmul %35, %6, %cst_11 {dimension_numbers = #tpu.dot_dimension_numbers<[1], [1], [0], [0], [0, 0, 1, 0], [], []>} : vector<1x30xbf16>, vector<30x30xbf16>, vector<1x30xf32> -> vector<1x30xf32>
    %37 = vector.extract_strided_slice %7 {offsets = [6, 0], sizes = [1, 30], strides = [1, 1]} : vector<8x30xf32> to vector<1x30xf32>
    %38 = arith.addf %37, %36 : vector<1x30xf32>
    %39 = math.tanh %38 : vector<1x30xf32>
    %40 = arith.truncf %39 : vector<1x30xf32> to vector<1x30xbf16>
    %cst_12 = arith.constant dense<0.000000e+00> : vector<1x30xf32>
    %41 = tpu.matmul %40, %6, %cst_12 {dimension_numbers = #tpu.dot_dimension_numbers<[1], [1], [0], [0], [0, 0, 1, 0], [], []>} : vector<1x30xbf16>, vector<30x30xbf16>, vector<1x30xf32> -> vector<1x30xf32>
    %42 = vector.extract_strided_slice %7 {offsets = [7, 0], sizes = [1, 30], strides = [1, 1]} : vector<8x30xf32> to vector<1x30xf32>
    %43 = arith.addf %42, %41 : vector<1x30xf32>
    %44 = math.tanh %43 : vector<1x30xf32>
    %45 = tpu.iota {dimensions = array<i32: 1>} : vector<1x30xi32>
    %c29_i32 = arith.constant 29 : i32
    %46 = vector.broadcast %c29_i32 : i32 to vector<1x30xi32>
    %47 = arith.cmpi eq, %45, %46 : vector<1x30xi32>
    %cst_13 = arith.constant 0.000000e+00 : f32
    %48 = vector.broadcast %cst_13 : f32 to vector<1x30xf32>
    %49 = arith.select %47, %44, %48 : vector<1x30xi1>, vector<1x30xf32>
    %cst_14 = arith.constant dense<0.000000e+00> : vector<1xf32>
    %50 = vector.multi_reduction <add>, %49, %cst_14 [1] : vector<1x30xf32> to vector<1xf32>
    %51 = vector.shape_cast %50 : vector<1xf32> to vector<1x1xf32>
    %c0_15 = arith.constant 0 : index
    %c0_16 = arith.constant 0 : index
    %52 = vector.load %arg3[%c0_15, %c0_16] : memref<1x1xf32, #tpu.memory_space<vmem>>, vector<1x1xf32>
    tpu.vector_store %arg3[%c0_15, %c0_16], %51 {strides = array<i32>} : memref<1x1xf32, #tpu.memory_space<vmem>>, vector<1x1xf32>,
    return
  }
}

</mosaic_0001>

<bundles_post_ra>
// kernel: rnn_forward.1
= control target key start
LH: loop header
LB: loop body
LE: loop exit
PB: predicated region body
PF: predicated region fallthrough
CT: control target
= control target key end

     0   :  { %vm30_vm0 = vcmask 31744   ;;  %v611_v2 = vmov 0.0   ;;  %vm612_vm1 = vmmov 0   ;;  %vm82_vm2 = vcmask 244736   ;;  %s745_s0 = inlined_call_operand.vmem [shape: f32[1,8,4], index: 0, kind: input, shape index: {}]   ;;  %s746_s1 = inlined_call_operand.vmem [shape: f32[30,4], index: 1, kind: input, shape index: {}]   ;;  %s747_s2 = inlined_call_operand.vmem [shape: f32[30,30], index: 2, kind: input, shape index: {}]   ;;  %s748_s3 = inlined_call_operand.hbm [shape: f32[1,1], index: 3, kind: output, shape index: {}]  }
   0x1   :  { %v18_v0 = vld [vmem:[%s746_s1] sm:$0xff]  ;;  %v19_v1 = vld [vmem:[%s746_s1 + $0x8] sm:$0xff]  ;;  %504 = vmatprep.subr.bf16.mxu0 %v611_v2  ;;  %v20_v4 = vld [vmem:[%s746_s1 + $0x10] sm:$0xff]  ;;  %508 = vmatprep.mubr.msk.bf16.mxu0 %vm612_vm1, %v611_v2 }
   0x2   :  { %v22_v3 = vpack.c.bf16 %v19_v1, %v18_v0  ;;  %v24_v5 = vld [vmem:[%s747_s2] sm:$0xff]  ;;  %v21_v6 = vld [vmem:[%s746_s1 + $0x18] sm:$0x3f]  ;;  %512 = vmatprep.subr.bf16.mxu1 %v611_v2  ;;  %v25_v7 = vld [vmem:[%s747_s2 + $0x8] sm:$0xff]  ;;  %516 = vmatprep.mubr.msk.bf16.mxu1 %vm612_vm1, %v611_v2 }
   0x3   :  { %8 = vsyncpa [#allocation3], 0  ;;  %v28_v9 = vpack.c.bf16 %v25_v7, %v24_v5  ;;  %v23_v10 = vpack.c.bf16 %v21_v6, %v20_v4  ;;  %v16_v13 = vld [vmem:[%s745_s0] sm:$0xff]  ;;  %v26_v15 = vld [vmem:[%s747_s2 + $0x10] sm:$0xff]  ;;  %vm452_vm4 = vcmask 244743   ;;  %s613_s0 = smov [#allocation2]  }
   0x4   :  { %v35_v8 = vsel %vm30_vm0, %v22_v3, 0  ;;  %v17_v14 = vpack.c.bf16 %v16_v13, %v16_v13  ;;  %v27_v16 = vld [vmem:[%s747_s2 + $0x18] sm:$0x3f]  ;;  %s464_s2 = sshll.u32 %s613_s0, 4  ;;  %vm456_vm5 = vcmask 7175   ;;  %s465_s2 = int_to_ptr.vmem [resolvable:$true] %s464_s2 }
   0x5   :  { %505 = vmatpush3.bf16.xpose.msra.mxu0 %v35_v8  ;;  %v661_v11 = vsel %vm82_vm2, %v28_v9, 0  ;;  %v38_v12 = vsel %vm30_vm0, %v23_v10, 0  ;;  %v29_v17 = vpack.c.bf16 %v27_v16, %v26_v15  ;;  %s587_s29 = scalar_lea.vmem %s465_s2, 16  ;;  %s591_s30 = scalar_lea.vmem %s465_s2, 32 }
   0x6   :  { %506 = vmatprep.subr.bf16.mxu0 %v611_v2  ;;  %513 = vmatpush3.bf16.xpose.msra.mxu1 %v661_v11  ;;  %p588_p0 = scmp.ne.s32.totalorder %s465_s2, %s587_s29  ;;  %p592_p1 = scmp.lt.s32.totalorder %s465_s2, %s465_s2 }
   0x7   :  { %514 = vmatprep.subr.bf16.mxu1 %v611_v2  ;;  %v682_v18 = vsel %vm82_vm2, %v29_v17, 0  ;;  %p593_p2 = scmp.lt.s32.totalorder %s591_s30, %s587_s29 }
   0x9   :  { %p594_p3 = por %p593_p2, %p592_p1 }
   0xb   :  { %p595_p4 = pnand %p594_p3, %p588_p0 }
   0xd   :  { %507 = vmatpush3.bf16.xpose.msra.mxu0 %v38_v12 }
   0xe   :  { %520 = vmatprep.subr.bf16.mxu0 %v611_v2  ;;  %515 = vmatpush3.bf16.xpose.msra.mxu1 %v682_v18 }
   0xf   :  { %528 = vmatprep.subr.bf16.mxu1 %v611_v2 }
  0x14   :  { %509 = vmatmul.mubr.msk.bf16.vlgmr.msra.gmra.mrb[0].mxu0 %vm30_vm0, %v17_v14 }
  0x15   :  { %521 = vmatpush3.bf16.xpose.msra.mxu0 %v661_v11  ;;  %524 = vmatprep.mubr.msk.bf16.mxu0 %vm612_vm1, %v611_v2 }
  0x16   :  { %522 = vmatprep.subr.bf16.mxu0 %v611_v2 }
  0x1d   :  { %523 = vmatpush3.bf16.xpose.msra.mxu0 %v682_v18 }
  0x1e   :  { %536 = vmatprep.subr.bf16.mxu0 %v611_v2 }
  0xe7   :  { %v688_v19 = vpop.f32.mrb[0].mxu0 }
  0xe8   :  { %v510_v20 = vpop.f32.mrb[1].mxu0  ;;  %571 = vtanh.f32 %v688_v19 }
  0xe9   :  { %v77_v21 = vpop.f32.mrb[2].mxu0 }
  0xea   :  { %v511_v22 = vpop.f32.mrb[3].mxu0 }
  0xf2   :  { %v572_v23 = vpop.eup %571 }
  0xf3   :  { %v81_v24 = vpack.c.bf16 %v572_v23, %v572_v23 }
  0xf5   :  { %517 = vmatmul.mubr.msk.bf16.vlgmr.msra.gmra.mrb[0].mxu1 %vm82_vm2, %v81_v24  ;;  %v448_v24 = vlaneseq }
  0xf6   :  { %529 = vmatpush3.bf16.xpose.msra.mxu1 %v661_v11  ;;  %532 = vmatprep.mubr.msk.bf16.mxu1 %vm612_vm1, %v611_v2 }
  0xf7   :  { %530 = vmatprep.subr.bf16.mxu1 %v611_v2 }
  0xfe   :  { %531 = vmatpush3.bf16.xpose.msra.mxu1 %v682_v18 }
  0xff   :  { %544 = vmatprep.subr.bf16.mxu1 %v611_v2 }
 0x1c8   :  { %v126_v25 = vpop.f32.mrb[0].mxu1 }
 0x1c9   :  { %v133_v26 = vrot.slane %v126_v25, 7  ;;  %v518_v27 = vpop.f32.mrb[1].mxu1  ;;  %v449_v25 = vand.u32 127, %v448_v24 }
 0x1ca   :  { %v129_v28 = vpop.f32.mrb[2].mxu1 }
 0x1cb   :  { %v135_v29 = vadd.f32 %v133_v26, %v688_v19  ;;  %v519_v30 = vpop.f32.mrb[3].mxu1  ;;  %vm450_vm3 = vcmp.eq.s32.totalorder %v449_v25, 29 }
 0x1cd   :  { %573 = vtanh.f32 %v135_v29 }
 0x1d7   :  { %v574_v31 = vpop.eup %573 }
 0x1d8   :  { %v137_v32 = vpack.c.bf16 %v574_v31, %v574_v31 }
 0x1da   :  { %v139_v33 = vshrl.u32 %v137_v32, 16 }
 0x1dc   :  { %525 = vmatmul.mubr.msk.bf16.vlgmr.msra.gmra.mrb[4].mxu0 %vm82_vm2, %v139_v33 }
 0x1dd   :  { %537 = vmatpush3.bf16.xpose.msra.mxu0 %v661_v11  ;;  %540 = vmatprep.mubr.msk.bf16.mxu0 %vm612_vm1, %v611_v2 }
 0x1de   :  { %538 = vmatprep.subr.bf16.mxu0 %v611_v2 }
 0x1e5   :  { %539 = vmatpush3.bf16.xpose.msra.mxu0 %v682_v18 }
 0x1e6   :  { %552 = vmatprep.subr.bf16.mxu0 %v611_v2 }
 0x2af   :  { %v178_v34 = vpop.f32.mrb[4].mxu0 }
 0x2b0   :  { %v185_v35 = vrot.slane %v178_v34, 6  ;;  %v526_v36 = vpop.f32.mrb[5].mxu0 }
 0x2b1   :  { %v181_v37 = vpop.f32.mrb[6].mxu0 }
 0x2b2   :  { %v187_v38 = vadd.f32 %v185_v35, %v688_v19  ;;  %v527_v39 = vpop.f32.mrb[7].mxu0 }
 0x2b4   :  { %575 = vtanh.f32 %v187_v38 }
 0x2be   :  { %v576_v40 = vpop.eup %575 }
 0x2bf   :  { %v189_v41 = vpack.c.bf16 %v576_v40, %v576_v40 }
 0x2c1   :  { %v191_v42 = vrot.slane %v189_v41, 1 }
 0x2c3   :  { %533 = vmatmul.mubr.msk.bf16.vlgmr.msra.gmra.mrb[4].mxu1 %vm82_vm2, %v191_v42 }
 0x2c4   :  { %545 = vmatpush3.bf16.xpose.msra.mxu1 %v661_v11  ;;  %548 = vmatprep.mubr.msk.bf16.mxu1 %vm612_vm1, %v611_v2 }
 0x2c5   :  { %546 = vmatprep.subr.bf16.mxu1 %v611_v2 }
 0x2cc   :  { %547 = vmatpush3.bf16.xpose.msra.mxu1 %v682_v18 }
 0x2cd   :  { %560 = vmatprep.subr.bf16.mxu1 %v611_v2 }
 0x396   :  { %v229_v43 = vpop.f32.mrb[4].mxu1 }
 0x397   :  { %v236_v44 = vrot.slane %v229_v43, 5  ;;  %v534_v45 = vpop.f32.mrb[5].mxu1 }
 0x398   :  { %v232_v46 = vpop.f32.mrb[6].mxu1 }
 0x399   :  { %v238_v47 = vadd.f32 %v236_v44, %v688_v19  ;;  %v535_v48 = vpop.f32.mrb[7].mxu1 }
 0x39b   :  { %577 = vtanh.f32 %v238_v47 }
 0x3a5   :  { %v578_v49 = vpop.eup %577 }
 0x3a6   :  { %v240_v50 = vpack.c.bf16 %v578_v49, %v578_v49 }
 0x3a8   :  { %v242_v51 = vshrl.u32 %v240_v50, 16 }
 0x3aa   :  { %v244_v52 = vrot.slane %v242_v51, 1 }
 0x3ac   :  { %541 = vmatmul.mubr.msk.bf16.vlgmr.msra.gmra.mrb[8].mxu0 %vm82_vm2, %v244_v52 }
 0x3ad   :  { %553 = vmatpush3.bf16.xpose.msra.mxu0 %v661_v11  ;;  %556 = vmatprep.mubr.msk.bf16.mxu0 %vm612_vm1, %v611_v2 }
 0x3ae   :  { %554 = vmatprep.subr.bf16.mxu0 %v611_v2 }
 0x3b5   :  { %555 = vmatpush3.bf16.xpose.msra.mxu0 %v682_v18 }
 0x47f   :  { %v282_v53 = vpop.f32.mrb[8].mxu0 }
 0x480   :  { %v289_v54 = vrot.slane %v282_v53, 4  ;;  %v542_v55 = vpop.f32.mrb[9].mxu0 }
 0x481   :  { %v285_v56 = vpop.f32.mrb[10].mxu0 }
 0x482   :  { %v291_v57 = vadd.f32 %v289_v54, %v688_v19  ;;  %v543_v58 = vpop.f32.mrb[11].mxu0 }
 0x484   :  { %579 = vtanh.f32 %v291_v57 }
 0x48e   :  { %v580_v59 = vpop.eup %579 }
 0x48f   :  { %v293_v60 = vpack.c.bf16 %v580_v59, %v580_v59 }
 0x491   :  { %v295_v61 = vrot.slane %v293_v60, 2 }
 0x493   :  { %549 = vmatmul.mubr.msk.bf16.vlgmr.msra.gmra.mrb[8].mxu1 %vm82_vm2, %v295_v61 }
 0x494   :  { %561 = vmatpush3.bf16.xpose.msra.mxu1 %v661_v11  ;;  %564 = vmatprep.mubr.msk.bf16.mxu1 %vm612_vm1, %v611_v2 }
 0x495   :  { %562 = vmatprep.subr.bf16.mxu1 %v611_v2 }
 0x49c   :  { %563 = vmatpush3.bf16.xpose.msra.mxu1 %v682_v18 }
 0x566   :  { %v333_v62 = vpop.f32.mrb[8].mxu1 }
 0x567   :  { %v340_v63 = vrot.slane %v333_v62, 3  ;;  %v550_v0 = vpop.f32.mrb[9].mxu1 }
 0x568   :  { %v336_v1 = vpop.f32.mrb[10].mxu1 }
 0x569   :  { %v342_v3 = vadd.f32 %v340_v63, %v688_v19  ;;  %v551_v4 = vpop.f32.mrb[11].mxu1 }
 0x56b   :  { %581 = vtanh.f32 %v342_v3 }
 0x575   :  { %v582_v5 = vpop.eup %581 }
 0x576   :  { %v344_v6 = vpack.c.bf16 %v582_v5, %v582_v5 }
 0x578   :  { %v346_v7 = vshrl.u32 %v344_v6, 16 }
 0x57a   :  { %v348_v8 = vrot.slane %v346_v7, 2 }
 0x57c   :  { %557 = vmatmul.mubr.msk.bf16.vlgmr.msra.gmra.mrb[12].mxu0 %vm82_vm2, %v348_v8 }
 0x64f   :  { %v386_v9 = vpop.f32.mrb[12].mxu0 }
 0x650   :  { %v393_v10 = vrot.slane %v386_v9, 2  ;;  %v558_v11 = vpop.f32.mrb[13].mxu0 }
 0x651   :  { %v389_v2 = vpop.f32.mrb[14].mxu0 }
 0x652   :  { %v395_v12 = vadd.f32 %v393_v10, %v688_v19  ;;  %v559_v13 = vpop.f32.mrb[15].mxu0 }
 0x654   :  { %583 = vtanh.f32 %v395_v12 }
 0x65e   :  { %v584_v14 = vpop.eup %583 }
 0x65f   :  { %v397_v15 = vpack.c.bf16 %v584_v14, %v584_v14 }
 0x661   :  { %v399_v16 = vrot.slane %v397_v15, 3 }
 0x663   :  { %565 = vmatmul.mubr.msk.bf16.vlgmr.msra.gmra.mrb[12].mxu1 %vm82_vm2, %v399_v16 }
 0x736   :  { %v437_v17 = vpop.f32.mrb[12].mxu1 }
 0x737   :  { %v444_v18 = vrot.slane %v437_v17, 1  ;;  %v566_v20 = vpop.f32.mrb[13].mxu1 }
 0x738   :  { %v440_v21 = vpop.f32.mrb[14].mxu1 }
 0x739   :  { %v446_v22 = vadd.f32 %v444_v18, %v688_v19  ;;  %v567_v23 = vpop.f32.mrb[15].mxu1 }
 0x73b   :  { %585 = vtanh.f32 %v446_v22 }
 0x745   :  { %v586_v26 = vpop.eup %585 }
 0x746   :  { %v451_v27 = vsel %vm450_vm3, %v586_v26, 0.0 }
 0x747   :  { %v453_v28 = vsel %vm452_vm4, %v451_v27, 0.0 }
 0x748   :  { %454 = vadd.xlane.f32.xlu0 %v453_v28 }
 0x7d5   :  { %v455_v29 = vpop.xlane.xlu0 %454 }
 0x7d6   :  { %457 = vst.msk [vmem:[#allocation2 - $0x7] sm:$0x80] %vm456_vm5, %v455_v29 }
 0x7d7   :  { %598 = shalt.err (!%p595_p4)
}
 0x7d8   :  { %s599_s6 = scalar_lea.hbm %s748_s3, 16 }
 0x7d9   :  { %p600_p5 = scmp.ne.s32.totalorder %s748_s3, %s599_s6  ;;  %p603_p6 = scmp.lt.u32.totalorder %s599_s6, %s748_s3 }
 0x7db   :  { %p605_p7 = pnand %p603_p6, %p600_p5 }
 0x7dd   :  { %608 = shalt.err (!%p605_p7)
}
 0x7de   :  { %467 = dma.vmem_to_hbm [thread:$0]  %s465_s2, 16, %s748_s3, [#allocation3]  }
 0x7df   :  { %609 = dma.done.wait [#allocation3], 16  }
 0x7e0   :  { %610 = vsyncadd [#allocation3], 4294967280 }
 0x7e1   :  { %471 = vsyncpa [#allocation3], 1 }

</bundles_post_ra>
